<compile_context>
chip_gen: v6e
topology: v6e:2x2x1
jax: 0.10.0
libtpu: 0.0.40
codegen_flags: <defaults>
</compile_context>

<pallas_src>
import functools

import jax
import jax.numpy as jnp
from jax.experimental import pallas as pl
from jax.experimental.pallas import tpu as pltpu

NUM_STATE = 4      # maze observation dim
NUM_ACTION = 4     # ['u', 'd', 'l', 'r']
HIDDEN = 128
LANE = 128         # padded feature / Q-value width (lane-dense)
MAX_BLOCK_B = 256  # batch-tile cap; ~(x + q) * 2 bufs ~= 0.5 MiB VMEM, weights ~0.2 MiB


def mlp_kernel(x_ref, w1_ref, b1_ref, w2_ref, b2_ref, w3_ref, b3_ref,
               q_ref, a_ref):
    # x_ref: (TB, 128) f32, features zero-padded past NUM_STATE.
    x = x_ref[...]
    h1 = jnp.dot(x, w1_ref[...], preferred_element_type=jnp.float32)    # (TB, 128) MXU
    h1 = jnp.maximum(h1 + b1_ref[...], 0.0)                             # ReLU (VPU)
    h2 = jnp.dot(h1, w2_ref[...], preferred_element_type=jnp.float32)   # (TB, 128) MXU
    h2 = jnp.maximum(h2 + b2_ref[...], 0.0)                             # ReLU (VPU)
    q = jnp.dot(h2, w3_ref[...], preferred_element_type=jnp.float32)    # (TB, 128) MXU
    q = q + b3_ref[...]                                                 # pad lanes stay 0
    q_ref[...] = q.astype(q_ref.dtype)                                  # unmasked lane-dense vst

    # Fused greedy-action selection over the NUM_ACTION real lanes (VPU/XLU filler).
    lane = jax.lax.broadcasted_iota(jnp.int32, q.shape, 1)
    valid = lane < NUM_ACTION
    q_m = jnp.where(valid, q, -jnp.inf)
    qmax = jnp.max(q_m, axis=-1, keepdims=True)
    idx = jnp.where((q_m == qmax) & valid, lane, NUM_ACTION)            # first max index
    a_ref[...] = jnp.min(idx, axis=-1, keepdims=True).astype(jnp.int32)


def _round_up(x, m):
    return (x + m - 1) // m * m


@functools.partial(jax.jit, static_argnames=("return_action",))
def net_forward(x, packed_params, *, return_action=False):
    """x: (B, NUM_STATE) f32. Returns Q-values (B, NUM_ACTION) [and greedy actions]."""
    w1p, b1, w2, b2, w3p, b3p = packed_params
    B = x.shape[0]

    # Adaptive batch tile: single tiny tile for acting, few big tiles for replay.
    block_b = min(MAX_BLOCK_B, max(8, _round_up(B, 8)))
    n_tiles = pl.cdiv(B, block_b)
    Bp = n_tiles * block_b

    # Lane-dense, batch-padded input slab (pad rows and pad features are zero).
    xp = jnp.zeros((Bp, LANE), jnp.float32).at[:B, :NUM_STATE].set(
        x.astype(jnp.float32))

    const = lambda i: (0, 0)   # weights/biases: same block every grid step (VMEM-resident)
    flops = 2 * Bp * (LANE * HIDDEN + HIDDEN * HIDDEN + HIDDEN * LANE)
    bytes_accessed = 4 * (Bp * LANE * 2                     # x in, q out
                          + LANE * HIDDEN + HIDDEN * HIDDEN + HIDDEN * LANE
                          + 2 * HIDDEN + LANE) + 4 * Bp     # biases + actions

    q_pad, a_pad = pl.pallas_call(
        mlp_kernel,
        out_shape=(
            jax.ShapeDtypeStruct((Bp, LANE), jnp.float32),
            jax.ShapeDtypeStruct((Bp, 1), jnp.int32),
        ),
        grid=(n_tiles,),
        in_specs=[
            pl.BlockSpec((block_b, LANE), lambda i: (i, 0)),   # x tile
            pl.BlockSpec((LANE, HIDDEN), const),               # w1 (row-padded)
            pl.BlockSpec((1, HIDDEN), const),                  # b1
            pl.BlockSpec((HIDDEN, HIDDEN), const),             # w2
            pl.BlockSpec((1, HIDDEN), const),                  # b2
            pl.BlockSpec((HIDDEN, LANE), const),               # w3 (col-padded)
            pl.BlockSpec((1, LANE), const),                    # b3 (padded)
        ],
        out_specs=(
            pl.BlockSpec((block_b, LANE), lambda i: (i, 0)),   # padded Q-values
            pl.BlockSpec((block_b, 1), lambda i: (i, 0)),      # greedy actions
        ),
        compiler_params=pltpu.CompilerParams(
            dimension_semantics=("parallel",),                 # shard batch tiles across TCs (v7x)
        ),
        cost_estimate=pl.CostEstimate(flops=flops, transcendentals=0,
                                      bytes_accessed=bytes_accessed),
    )(xp, w1p, b1, w2, b2, w3p, b3p)

    q = q_pad[:B, :NUM_ACTION]
    if return_action:
        return q, a_pad[:B, 0]
    return q


def init_params(key):
    """Deterministic init mimicking PyTorch nn.Linear default (U[-1/sqrt(fan_in), +])."""
    def linear(key, fan_in, fan_out):
        kw, kb = jax.random.split(key)
        bound = 1.0 / (fan_in ** 0.5)
        # stored as (in, out) so the kernel computes x @ W + b
        w = jax.random.uniform(kw, (fan_in, fan_out), jnp.float32, -bound, bound)
        b = jax.random.uniform(kb, (1, fan_out), jnp.float32, -bound, bound)
        return w, b

    k1, k2, k3 = jax.random.split(key, 3)
    w1, b1 = linear(k1, NUM_STATE, HIDDEN)
    w2, b2 = linear(k2, HIDDEN, HIDDEN)
    w3, b3 = linear(k3, HIDDEN, NUM_ACTION)
    return (w1, b1, w2, b2, w3, b3)


def pack_params(params):
    """One-time zero-padding to lane-dense (multiple-of-128) weight tiles."""
    w1, b1, w2, b2, w3, b3 = params
    w1p = jnp.zeros((LANE, HIDDEN), jnp.float32).at[:NUM_STATE, :].set(w1)   # zero rows -> exact
    w3p = jnp.zeros((HIDDEN, LANE), jnp.float32).at[:, :NUM_ACTION].set(w3)  # zero cols -> pad Q = 0
    b3p = jnp.zeros((1, LANE), jnp.float32).at[:, :NUM_ACTION].set(b3)
    return (w1p, b1, w2, b2, w3p, b3p)


def net_forward_ref(x, params):
    """Pure-JAX reference (unpadded, matches PyTorch semantics)."""
    w1, b1, w2, b2, w3, b3 = params
    h1 = jnp.maximum(x @ w1 + b1, 0.0)
    h2 = jnp.maximum(h1 @ w2 + b2, 0.0)
    return h2 @ w3 + b3


if __name__ == "__main__":
    key = jax.random.PRNGKey(0)
    k_params, k_x1, k_x2, k_x3 = jax.random.split(key, 4)

    params = init_params(k_params)
    packed = pack_params(params)

    # Acting-style batch: single 8-row tile + fused argmax.
    x_small = jax.random.normal(k_x1, (8, NUM_STATE), dtype=jnp.float32)
    q_small, a_small = net_forward(x_small, packed, return_action=True)
    q_small = jax.block_until_ready(q_small)
    a_small = jax.block_until_ready(a_small)
    ref_small = net_forward_ref(x_small, params)
    assert q_small.shape == (8, NUM_ACTION)
    assert jnp.allclose(q_small, ref_small, atol=1e-5, rtol=1e-5)
    assert jnp.array_equal(a_small, jnp.argmax(ref_small, axis=-1))

    # Ragged batch: exercises batch-row padding inside a single adaptive tile.
    x_mid = jax.random.normal(k_x2, (130, NUM_STATE), dtype=jnp.float32)
    q_mid = jax.block_until_ready(net_forward(x_mid, packed))
    ref_mid = net_forward_ref(x_mid, params)
    assert q_mid.shape == (130, NUM_ACTION)
    assert jnp.allclose(q_mid, ref_mid, atol=1e-5, rtol=1e-5)

    # Replay-style batch: multi-step batch grid (grid=(2,), weights VMEM-resident).
    x_big = jax.random.normal(k_x3, (512, NUM_STATE), dtype=jnp.float32)
    q_big = jax.block_until_ready(net_forward(x_big, packed))
    ref_big = net_forward_ref(x_big, params)
    assert q_big.shape == (512, NUM_ACTION)
    assert jnp.allclose(q_big, ref_big, atol=1e-5, rtol=1e-5)

    print("KERNEL_OK")
</pallas_src>

<mosaic_0001>
module attributes {stable_mosaic.version = 11 : i64} {
  func.func @mlp_kernel(%arg0: i32, %arg1: memref<8x128xf32, #tpu.memory_space<vmem>>, %arg2: memref<128x128xf32, #tpu.memory_space<vmem>>, %arg3: memref<1x128xf32, #tpu.memory_space<vmem>>, %arg4: memref<128x128xf32, #tpu.memory_space<vmem>>, %arg5: memref<1x128xf32, #tpu.memory_space<vmem>>, %arg6: memref<128x128xf32, #tpu.memory_space<vmem>>, %arg7: memref<1x128xf32, #tpu.memory_space<vmem>>, %arg8: memref<8x128xf32, #tpu.memory_space<vmem>>, %arg9: memref<8x1xi32, #tpu.memory_space<vmem>>) attributes {dimension_semantics = [#tpu.dimension_semantics<parallel>], iteration_bounds = array<i64: 1>, scalar_prefetch = 0 : i64, scratch_operands = 0 : i64, tpu.core_type = #tpu.core_type<tc>, window_params = [{transform_indices = @transform_0, window_bounds = array<i64: 8, 128>}, {pipeline_mode = #tpu.pipeline_mode<synchronous>, transform_indices = @transform_1, window_bounds = array<i64: 128, 128>}, {pipeline_mode = #tpu.pipeline_mode<synchronous>, transform_indices = @transform_2, window_bounds = array<i64: 1, 128>}, {pipeline_mode = #tpu.pipeline_mode<synchronous>, transform_indices = @transform_3, window_bounds = array<i64: 128, 128>}, {pipeline_mode = #tpu.pipeline_mode<synchronous>, transform_indices = @transform_4, window_bounds = array<i64: 1, 128>}, {pipeline_mode = #tpu.pipeline_mode<synchronous>, transform_indices = @transform_5, window_bounds = array<i64: 128, 128>}, {pipeline_mode = #tpu.pipeline_mode<synchronous>, transform_indices = @transform_6, window_bounds = array<i64: 1, 128>}, {transform_indices = @transform_7, window_bounds = array<i64: 8, 128>}, {transform_indices = @transform_8, window_bounds = array<i64: 8, 1>}]} {
    %c0 = arith.constant 0 : index
    %c0_0 = arith.constant 0 : index
    %0 = vector.load %arg1[%c0, %c0_0] : memref<8x128xf32, #tpu.memory_space<vmem>>, vector<8x128xf32>
    %c0_1 = arith.constant 0 : index
    %c0_2 = arith.constant 0 : index
    %1 = vector.load %arg2[%c0_1, %c0_2] : memref<128x128xf32, #tpu.memory_space<vmem>>, vector<128x128xf32>
    %cst = arith.constant dense<0.000000e+00> : vector<8x128xf32>
    %2 = tpu.matmul %0, %1, %cst {dimension_numbers = #tpu.dot_dimension_numbers<[1], [0], [0], [1], [0, 0, 1, 1], [], []>} : vector<8x128xf32>, vector<128x128xf32>, vector<8x128xf32> -> vector<8x128xf32>
    %c0_3 = arith.constant 0 : index
    %c0_4 = arith.constant 0 : index
    %3 = vector.load %arg3[%c0_3, %c0_4] : memref<1x128xf32, #tpu.memory_space<vmem>>, vector<1x128xf32>
    %4 = vector.broadcast %3 : vector<1x128xf32> to vector<8x128xf32>
    %5 = arith.addf %2, %4 : vector<8x128xf32>
    %cst_5 = arith.constant 0.000000e+00 : f32
    %6 = vector.broadcast %cst_5 : f32 to vector<8x128xf32>
    %7 = arith.maximumf %5, %6 : vector<8x128xf32>
    %c0_6 = arith.constant 0 : index
    %c0_7 = arith.constant 0 : index
    %8 = vector.load %arg4[%c0_6, %c0_7] : memref<128x128xf32, #tpu.memory_space<vmem>>, vector<128x128xf32>
    %cst_8 = arith.constant dense<0.000000e+00> : vector<8x128xf32>
    %9 = tpu.matmul %7, %8, %cst_8 {dimension_numbers = #tpu.dot_dimension_numbers<[1], [0], [0], [1], [0, 0, 1, 1], [], []>} : vector<8x128xf32>, vector<128x128xf32>, vector<8x128xf32> -> vector<8x128xf32>
    %c0_9 = arith.constant 0 : index
    %c0_10 = arith.constant 0 : index
    %10 = vector.load %arg5[%c0_9, %c0_10] : memref<1x128xf32, #tpu.memory_space<vmem>>, vector<1x128xf32>
    %11 = vector.broadcast %10 : vector<1x128xf32> to vector<8x128xf32>
    %12 = arith.addf %9, %11 : vector<8x128xf32>
    %cst_11 = arith.constant 0.000000e+00 : f32
    %13 = vector.broadcast %cst_11 : f32 to vector<8x128xf32>
    %14 = arith.maximumf %12, %13 : vector<8x128xf32>
    %c0_12 = arith.constant 0 : index
    %c0_13 = arith.constant 0 : index
    %15 = vector.load %arg6[%c0_12, %c0_13] : memref<128x128xf32, #tpu.memory_space<vmem>>, vector<128x128xf32>
    %cst_14 = arith.constant dense<0.000000e+00> : vector<8x128xf32>
    %16 = tpu.matmul %14, %15, %cst_14 {dimension_numbers = #tpu.dot_dimension_numbers<[1], [0], [0], [1], [0, 0, 1, 1], [], []>} : vector<8x128xf32>, vector<128x128xf32>, vector<8x128xf32> -> vector<8x128xf32>
    %c0_15 = arith.constant 0 : index
    %c0_16 = arith.constant 0 : index
    %17 = vector.load %arg7[%c0_15, %c0_16] : memref<1x128xf32, #tpu.memory_space<vmem>>, vector<1x128xf32>
    %18 = vector.broadcast %17 : vector<1x128xf32> to vector<8x128xf32>
    %19 = arith.addf %16, %18 : vector<8x128xf32>
    %c0_17 = arith.constant 0 : index
    %c0_18 = arith.constant 0 : index
    %20 = vector.load %arg8[%c0_17, %c0_18] : memref<8x128xf32, #tpu.memory_space<vmem>>, vector<8x128xf32>
    tpu.vector_store %arg8[%c0_17, %c0_18], %19 {strides = array<i32>} : memref<8x128xf32, #tpu.memory_space<vmem>>, vector<8x128xf32>,
    %21 = tpu.iota {dimensions = array<i32: 1>} : vector<8x128xi32>
    %c4_i32 = arith.constant 4 : i32
    %22 = vector.broadcast %c4_i32 : i32 to vector<8x128xi32>
    %23 = arith.cmpi slt, %21, %22 : vector<8x128xi32>
    %cst_19 = arith.constant 0xFF800000 : f32
    %24 = vector.broadcast %cst_19 : f32 to vector<8x128xf32>
    %25 = arith.select %23, %19, %24 : vector<8x128xi1>, vector<8x128xf32>
    %cst_20 = arith.constant dense<0xFF800000> : vector<8xf32>
    %26 = vector.multi_reduction <maximumf>, %25, %cst_20 [1] : vector<8x128xf32> to vector<8xf32>
    %27 = vector.shape_cast %26 : vector<8xf32> to vector<8x1xf32>
    %28 = vector.broadcast %27 : vector<8x1xf32> to vector<8x128xf32>
    %29 = arith.cmpf oeq, %25, %28 : vector<8x128xf32>
    %30 = arith.andi %29, %23 : vector<8x128xi1>
    %c4_i32_21 = arith.constant 4 : i32
    %31 = vector.broadcast %c4_i32_21 : i32 to vector<8x128xi32>
    %32 = arith.select %30, %21, %31 : vector<8x128xi1>, vector<8x128xi32>
    %cst_22 = arith.constant dense<2147483647> : vector<8xi32>
    %33 = vector.multi_reduction <minsi>, %32, %cst_22 [1] : vector<8x128xi32> to vector<8xi32>
    %34 = vector.shape_cast %33 : vector<8xi32> to vector<8x1xi32>
    %c0_23 = arith.constant 0 : index
    %c0_24 = arith.constant 0 : index
    %35 = vector.load %arg9[%c0_23, %c0_24] : memref<8x1xi32, #tpu.memory_space<vmem>>, vector<8x1xi32>
    tpu.vector_store %arg9[%c0_23, %c0_24], %34 {strides = array<i32>} : memref<8x1xi32, #tpu.memory_space<vmem>>, vector<8x1xi32>,
    return
  }
  func.func @transform_0(%arg0: i32) -> (i32, i32) {
    %c0_i32 = arith.constant 0 : i32
    %c0_i32_0 = arith.constant 0 : i32
    return %arg0, %c0_i32 : i32, i32
  }
  func.func @transform_1(%arg0: i32) -> (i32, i32) {
    %c0_i32 = arith.constant 0 : i32
    %c0_i32_0 = arith.constant 0 : i32
    %c0_i32_1 = arith.constant 0 : i32
    return %c0_i32, %c0_i32_0 : i32, i32
  }
  func.func @transform_2(%arg0: i32) -> (i32, i32) {
    %c0_i32 = arith.constant 0 : i32
    %c0_i32_0 = arith.constant 0 : i32
    %c0_i32_1 = arith.constant 0 : i32
    return %c0_i32, %c0_i32_0 : i32, i32
  }
  func.func @transform_3(%arg0: i32) -> (i32, i32) {
    %c0_i32 = arith.constant 0 : i32
    %c0_i32_0 = arith.constant 0 : i32
    %c0_i32_1 = arith.constant 0 : i32
    return %c0_i32, %c0_i32_0 : i32, i32
  }
  func.func @transform_4(%arg0: i32) -> (i32, i32) {
    %c0_i32 = arith.constant 0 : i32
    %c0_i32_0 = arith.constant 0 : i32
    %c0_i32_1 = arith.constant 0 : i32
    return %c0_i32, %c0_i32_0 : i32, i32
  }
  func.func @transform_5(%arg0: i32) -> (i32, i32) {
    %c0_i32 = arith.constant 0 : i32
    %c0_i32_0 = arith.constant 0 : i32
    %c0_i32_1 = arith.constant 0 : i32
    return %c0_i32, %c0_i32_0 : i32, i32
  }
  func.func @transform_6(%arg0: i32) -> (i32, i32) {
    %c0_i32 = arith.constant 0 : i32
    %c0_i32_0 = arith.constant 0 : i32
    %c0_i32_1 = arith.constant 0 : i32
    return %c0_i32, %c0_i32_0 : i32, i32
  }
  func.func @transform_7(%arg0: i32) -> (i32, i32) {
    %c0_i32 = arith.constant 0 : i32
    %c0_i32_0 = arith.constant 0 : i32
    return %arg0, %c0_i32 : i32, i32
  }
  func.func @transform_8(%arg0: i32) -> (i32, i32) {
    %c0_i32 = arith.constant 0 : i32
    %c0_i32_0 = arith.constant 0 : i32
    return %arg0, %c0_i32 : i32, i32
  }
}

</mosaic_0001>

<bundles_post_ra>
// kernel: net_forward.1
= control target key start
LH: loop header
LB: loop body
LE: loop exit
PB: predicated region body
PF: predicated region fallthrough
CT: control target
= control target key end

     0   :  { %14 = vsyncpa [#allocation3], 0  ;;  %s750_s0 = inlined_call_operand.vmem [shape: f32[8,128], index: 0, kind: input, shape index: {}]   ;;  %s751_s1 = inlined_call_operand.hbm [shape: f32[128,128], index: 1, kind: input, shape index: {}]   ;;  %s752_s2 = inlined_call_operand.vmem [shape: f32[1,128], index: 2, kind: input, shape index: {}]   ;;  %s753_s3 = inlined_call_operand.hbm [shape: f32[128,128], index: 3, kind: input, shape index: {}]   ;;  %s754_s4 = inlined_call_operand.vmem [shape: f32[1,128], index: 4, kind: input, shape index: {}]   ;;  %s755_s5 = inlined_call_operand.hbm [shape: f32[128,128], index: 5, kind: input, shape index: {}]   ;;  %s756_s6 = inlined_call_operand.vmem [shape: f32[1,128], index: 6, kind: input, shape index: {}]   ;;  %s757_s7 = inlined_call_operand.vmem [shape: f32[8,128], index: 7, kind: output, shape index: {0}]   ;;  %s758_s8 = inlined_call_operand.vmem [shape: s32[8,1], index: 8, kind: output, shape index: {1}]  }
   0x1   :  { %15 = vsyncpa [#allocation5], 0  ;;  %s617_s27 = smov [#allocation4]   ;;  %s618_s29 = smov [#allocation2]  }
   0x2   :  { %s37_s28 = sshll.u32 %s617_s27, 4  ;;  %s23_s30 = sshll.u32 %s618_s29, 4  ;;  %s38_s28 = int_to_ptr.vmem [resolvable:$true] %s37_s28  ;;  %s24_s30 = int_to_ptr.vmem [resolvable:$true] %s23_s30 }
   0x3   :  { %s561_s9 = scalar_lea.vmem %s38_s28, 2048  ;;  %p566_p1 = scmp.lt.s32.totalorder %s38_s28, %s38_s28 }
   0x4   :  { %p562_p0 = scmp.ne.s32.totalorder %s38_s28, %s561_s9  ;;  %p567_p2 = scmp.lt.s32.totalorder %s561_s9, %s561_s9 }
   0x6   :  { %p568_p3 = por %p567_p2, %p566_p1 }
   0x8   :  { %p569_p4 = pnand %p568_p3, %p562_p0 }
   0xa   :  { %572 = shalt.err (!%p569_p4)
}
   0xb   :  { %s619_s10 = smov 128   ;;  %s620_s11 = smov 8  }
   0xc   :  { %43 = dma.hbm_to_vmem [thread:$0]  %s753_s3, 2048, %s38_s28, [#allocation5], %s619_s10, %s619_s10, %s620_s11  }
   0xd   :  { %s581_s14 = scalar_lea.vmem %s24_s30, 2048  ;;  %p586_p6 = scmp.lt.s32.totalorder %s24_s30, %s24_s30 }
   0xe   :  { %p582_p5 = scmp.ne.s32.totalorder %s24_s30, %s581_s14  ;;  %p587_p7 = scmp.lt.s32.totalorder %s581_s14, %s581_s14 }
  0x10   :  { %p588_p8 = por %p587_p7, %p586_p6 }
  0x12   :  { %p589_p9 = pnand %p588_p8, %p582_p5 }
  0x14   :  { %592 = shalt.err (!%p589_p9)
}
  0x15   :  { %29 = dma.hbm_to_vmem [thread:$0]  %s751_s1, 2048, %s24_s30, [#allocation3], %s619_s10, %s619_s10, %s620_s11  }
  0x16   :  { %s621_s17 = smov [#allocation6]  }
  0x17   :  { %s51_s18 = sshll.u32 %s621_s17, 4  ;;  %s52_s18 = int_to_ptr.vmem [resolvable:$true] %s51_s18 }
  0x18   :  { %s601_s19 = scalar_lea.vmem %s52_s18, 2048  ;;  %p606_p11 = scmp.lt.s32.totalorder %s52_s18, %s52_s18 }
  0x19   :  { %p602_p10 = scmp.ne.s32.totalorder %s52_s18, %s601_s19  ;;  %p607_p12 = scmp.lt.s32.totalorder %s601_s19, %s601_s19 }
  0x1b   :  { %p608_p13 = por %p607_p12, %p606_p11 }
  0x1d   :  { %p609_p0 = pnand %p608_p13, %p602_p10 }
  0x1f   :  { %612 = shalt.err (!%p609_p0)
}
  0x20   :  { %57 = dma.hbm_to_vmem [thread:$0]  %s755_s5, 2048, %s52_s18, [#allocation5], %s619_s10, %s619_s10, %s620_s11  }
  0x21   :  { %613 = dma.done.wait [#allocation3], 2048  }
  0x22   :  { %614 = vsyncadd [#allocation3], 4294965248 }
  0x23   :  { %615 = dma.done.wait [#allocation5], 4096  }
  0x24   :  { %616 = vsyncadd [#allocation5], 4294963200  ;;  %v622_v0 = vmov 0.0   ;;  %vm623_vm0 = vmmov 0   ;;  %v85_v1 = vld [vmem:[#allocation2 + $0x78] sm:$0xff]  ;;  %v84_v2 = vld [vmem:[#allocation2 + $0x70] sm:$0xff]  ;;  %v352_v60 = vlaneseq }
  0x25   :  { %441 = vmatprep.subr.mxu0 %v622_v0  ;;  %473 = vmatprep.mubr.msk.f32.mxu0 %vm623_vm0, %v622_v0  ;;  %v83_v3 = vld [vmem:[#allocation2 + $0x68] sm:$0xff]  ;;  %v82_v4 = vld [vmem:[#allocation2 + $0x60] sm:$0xff]  ;;  %v179_v5 = vld [vmem:[#allocation4 + $0x78] sm:$0xff]  ;;  %vm375_vm5 = vcmask 7168  }
  0x26   :  { %476 = vmatprep.subr.mxu1 %v622_v0  ;;  %508 = vmatprep.mubr.msk.f32.mxu1 %vm623_vm0, %v622_v0  ;;  %v81_v6 = vld [vmem:[#allocation2 + $0x58] sm:$0xff]  ;;  %v178_v7 = vld [vmem:[#allocation4 + $0x70] sm:$0xff]  ;;  %v177_v8 = vld [vmem:[#allocation4 + $0x68] sm:$0xff]  ;;  %v353_v61 = vand.u32 127, %v352_v60 }
  0x27   :  { %442 = vmatpush3.msra.mxu0 %v85_v1  ;;  %477 = vmatpush3.msra.mxu1 %v179_v5  ;;  %v80_v9 = vld [vmem:[#allocation2 + $0x50] sm:$0xff]  ;;  %v176_v10 = vld [vmem:[#allocation4 + $0x60] sm:$0xff]  ;;  %v79_v11 = vld [vmem:[#allocation2 + $0x48] sm:$0xff] }
  0x28   :  { %443 = vmatprep.subr.mxu0 %v622_v0  ;;  %478 = vmatprep.subr.mxu1 %v622_v0  ;;  %v175_v12 = vld [vmem:[#allocation4 + $0x58] sm:$0xff]  ;;  %v78_v13 = vld [vmem:[#allocation2 + $0x40] sm:$0xff]  ;;  %v174_v14 = vld [vmem:[#allocation4 + $0x50] sm:$0xff]  ;;  %vm354_vm1 = vcmp.lt.s32.totalorder %v353_v61, 4 }
  0x29   :  { %444 = vmatpush3.msra.mxu0 %v84_v2  ;;  %479 = vmatpush3.msra.mxu1 %v178_v7  ;;  %v77_v15 = vld [vmem:[#allocation2 + $0x38] sm:$0xff]  ;;  %v173_v16 = vld [vmem:[#allocation4 + $0x48] sm:$0xff]  ;;  %v76_v17 = vld [vmem:[#allocation2 + $0x30] sm:$0xff] }
  0x2a   :  { %445 = vmatprep.subr.mxu0 %v622_v0  ;;  %480 = vmatprep.subr.mxu1 %v622_v0  ;;  %v172_v18 = vld [vmem:[#allocation4 + $0x40] sm:$0xff]  ;;  %v75_v19 = vld [vmem:[#allocation2 + $0x28] sm:$0xff]  ;;  %v171_v20 = vld [vmem:[#allocation4 + $0x38] sm:$0xff] }
  0x2b   :  { %446 = vmatpush3.msra.mxu0 %v83_v3  ;;  %481 = vmatpush3.msra.mxu1 %v177_v8  ;;  %v74_v21 = vld [vmem:[#allocation2 + $0x20] sm:$0xff]  ;;  %v170_v22 = vld [vmem:[#allocation4 + $0x30] sm:$0xff]  ;;  %v73_v23 = vld [vmem:[#allocation2 + $0x18] sm:$0xff] }
  0x2c   :  { %447 = vmatprep.subr.mxu0 %v622_v0  ;;  %482 = vmatprep.subr.mxu1 %v622_v0  ;;  %v169_v24 = vld [vmem:[#allocation4 + $0x28] sm:$0xff]  ;;  %v72_v25 = vld [vmem:[#allocation2 + $0x10] sm:$0xff]  ;;  %v168_v26 = vld [vmem:[#allocation4 + $0x20] sm:$0xff] }
  0x2d   :  { %448 = vmatpush3.msra.mxu0 %v82_v4  ;;  %483 = vmatpush3.msra.mxu1 %v176_v10  ;;  %v71_v27 = vld [vmem:[#allocation2 + $0x8] sm:$0xff]  ;;  %v167_v28 = vld [vmem:[#allocation4 + $0x18] sm:$0xff]  ;;  %v70_v29 = vld [vmem:[#allocation2] sm:$0xff] }
  0x2e   :  { %449 = vmatprep.subr.mxu0 %v622_v0  ;;  %484 = vmatprep.subr.mxu1 %v622_v0  ;;  %v69_v30 = vld [vmem:[%s750_s0] sm:$0xff]  ;;  %v166_v31 = vld [vmem:[#allocation4 + $0x10] sm:$0xff]  ;;  %v165_v32 = vld [vmem:[#allocation4 + $0x8] sm:$0xff] }
  0x2f   :  { %450 = vmatpush3.msra.mxu0 %v81_v6  ;;  %485 = vmatpush3.msra.mxu1 %v175_v12  ;;  %v164_v33 = vld [vmem:[#allocation4] sm:$0xff]  ;;  %v273_v34 = vld [vmem:[#allocation6 + $0x78] sm:$0xff]  ;;  %v272_v35 = vld [vmem:[#allocation6 + $0x70] sm:$0xff] }
  0x30   :  { %451 = vmatprep.subr.mxu0 %v622_v0  ;;  %486 = vmatprep.subr.mxu1 %v622_v0  ;;  %v271_v36 = vld [vmem:[#allocation6 + $0x68] sm:$0xff]  ;;  %v270_v37 = vld [vmem:[#allocation6 + $0x60] sm:$0xff]  ;;  %v269_v38 = vld [vmem:[#allocation6 + $0x58] sm:$0xff] }
  0x31   :  { %452 = vmatpush3.msra.mxu0 %v80_v9  ;;  %487 = vmatpush3.msra.mxu1 %v174_v14  ;;  %v268_v39 = vld [vmem:[#allocation6 + $0x50] sm:$0xff]  ;;  %v267_v40 = vld [vmem:[#allocation6 + $0x48] sm:$0xff]  ;;  %v266_v41 = vld [vmem:[#allocation6 + $0x40] sm:$0xff] }
  0x32   :  { %453 = vmatprep.subr.mxu0 %v622_v0  ;;  %488 = vmatprep.subr.mxu1 %v622_v0  ;;  %v265_v42 = vld [vmem:[#allocation6 + $0x38] sm:$0xff]  ;;  %v264_v43 = vld [vmem:[#allocation6 + $0x30] sm:$0xff]  ;;  %v263_v44 = vld [vmem:[#allocation6 + $0x28] sm:$0xff] }
  0x33   :  { %454 = vmatpush3.msra.mxu0 %v79_v11  ;;  %489 = vmatpush3.msra.mxu1 %v173_v16  ;;  %v262_v45 = vld [vmem:[#allocation6 + $0x20] sm:$0xff]  ;;  %v261_v46 = vld [vmem:[#allocation6 + $0x18] sm:$0xff]  ;;  %v260_v52 = vld [vmem:[#allocation6 + $0x10] sm:$0xff] }
  0x34   :  { %455 = vmatprep.subr.mxu0 %v622_v0  ;;  %490 = vmatprep.subr.mxu1 %v622_v0  ;;  %v387_v47 = vld [vmem:[%s752_s2] ss:$0 sm:$0xff]  ;;  %v259_v53 = vld [vmem:[#allocation6 + $0x8] sm:$0xff] }
  0x35   :  { %456 = vmatpush3.msra.mxu0 %v78_v13  ;;  %491 = vmatpush3.msra.mxu1 %v172_v18  ;;  %v258_v54 = vld [vmem:[#allocation6] sm:$0xff] }
  0x36   :  { %457 = vmatprep.subr.mxu0 %v622_v0  ;;  %492 = vmatprep.subr.mxu1 %v622_v0  ;;  %v388_v55 = vld [vmem:[%s754_s4] ss:$0 sm:$0xff] }
  0x37   :  { %458 = vmatpush3.msra.mxu0 %v77_v15  ;;  %493 = vmatpush3.msra.mxu1 %v171_v20  ;;  %v389_v62 = vld [vmem:[%s756_s6] ss:$0 sm:$0xff] }
  0x38   :  { %459 = vmatprep.subr.mxu0 %v622_v0  ;;  %494 = vmatprep.subr.mxu1 %v622_v0 }
  0x39   :  { %460 = vmatpush3.msra.mxu0 %v76_v17  ;;  %495 = vmatpush3.msra.mxu1 %v170_v22 }
  0x3a   :  { %461 = vmatprep.subr.mxu0 %v622_v0  ;;  %496 = vmatprep.subr.mxu1 %v622_v0 }
  0x3b   :  { %462 = vmatpush3.msra.mxu0 %v75_v19  ;;  %497 = vmatpush3.msra.mxu1 %v169_v24 }
  0x3c   :  { %463 = vmatprep.subr.mxu0 %v622_v0  ;;  %498 = vmatprep.subr.mxu1 %v622_v0 }
  0x3d   :  { %464 = vmatpush3.msra.mxu0 %v74_v21  ;;  %499 = vmatpush3.msra.mxu1 %v168_v26 }
  0x3e   :  { %465 = vmatprep.subr.mxu0 %v622_v0  ;;  %500 = vmatprep.subr.mxu1 %v622_v0 }
  0x3f   :  { %466 = vmatpush3.msra.mxu0 %v73_v23  ;;  %501 = vmatpush3.msra.mxu1 %v167_v28 }
  0x40   :  { %467 = vmatprep.subr.mxu0 %v622_v0  ;;  %502 = vmatprep.subr.mxu1 %v622_v0 }
  0x41   :  { %468 = vmatpush3.msra.mxu0 %v72_v25  ;;  %503 = vmatpush3.msra.mxu1 %v166_v31 }
  0x42   :  { %469 = vmatprep.subr.mxu0 %v622_v0  ;;  %504 = vmatprep.subr.mxu1 %v622_v0 }
  0x43   :  { %470 = vmatpush3.msra.mxu0 %v71_v27  ;;  %505 = vmatpush3.msra.mxu1 %v165_v32 }
  0x44   :  { %471 = vmatprep.subr.mxu0 %v622_v0  ;;  %506 = vmatprep.subr.mxu1 %v622_v0 }
  0x45   :  { %472 = vmatpush3.msra.mxu0 %v70_v29  ;;  %507 = vmatpush3.msra.mxu1 %v164_v33 }
  0x46   :  { %474 = vmatmul.mubr.f32.vlgmr.msra.gmra.mxu0 %v69_v30  ;;  %511 = vmatprep.subr.mxu0 %v622_v0 }
  0x47   :  { %543 = vmatprep.mubr.msk.f32.mxu0 %vm623_vm0, %v622_v0  ;;  %512 = vmatpush3.msra.mxu0 %v273_v34 }
  0x48   :  { %513 = vmatprep.subr.mxu0 %v622_v0 }
  0x49   :  { %514 = vmatpush3.msra.mxu0 %v272_v35 }
  0x4a   :  { %515 = vmatprep.subr.mxu0 %v622_v0 }
  0x4b   :  { %516 = vmatpush3.msra.mxu0 %v271_v36 }
  0x4c   :  { %517 = vmatprep.subr.mxu0 %v622_v0 }
  0x4d   :  { %518 = vmatpush3.msra.mxu0 %v270_v37 }
  0x4e   :  { %519 = vmatprep.subr.mxu0 %v622_v0 }
  0x4f   :  { %520 = vmatpush3.msra.mxu0 %v269_v38 }
  0x50   :  { %521 = vmatprep.subr.mxu0 %v622_v0 }
  0x51   :  { %522 = vmatpush3.msra.mxu0 %v268_v39 }
  0x52   :  { %523 = vmatprep.subr.mxu0 %v622_v0 }
  0x53   :  { %524 = vmatpush3.msra.mxu0 %v267_v40 }
  0x54   :  { %525 = vmatprep.subr.mxu0 %v622_v0 }
  0x55   :  { %526 = vmatpush3.msra.mxu0 %v266_v41 }
  0x56   :  { %527 = vmatprep.subr.mxu0 %v622_v0 }
  0x57   :  { %528 = vmatpush3.msra.mxu0 %v265_v42 }
  0x58   :  { %529 = vmatprep.subr.mxu0 %v622_v0 }
  0x59   :  { %530 = vmatpush3.msra.mxu0 %v264_v43 }
  0x5a   :  { %531 = vmatprep.subr.mxu0 %v622_v0 }
  0x5b   :  { %532 = vmatpush3.msra.mxu0 %v263_v44 }
  0x5c   :  { %533 = vmatprep.subr.mxu0 %v622_v0 }
  0x5d   :  { %534 = vmatpush3.msra.mxu0 %v262_v45 }
  0x5e   :  { %535 = vmatprep.subr.mxu0 %v622_v0 }
  0x5f   :  { %536 = vmatpush3.msra.mxu0 %v261_v46 }
  0x60   :  { %537 = vmatprep.subr.mxu0 %v622_v0 }
  0x61   :  { %538 = vmatpush3.msra.mxu0 %v260_v52 }
  0x62   :  { %539 = vmatprep.subr.mxu0 %v622_v0 }
  0x63   :  { %540 = vmatpush3.msra.mxu0 %v259_v53 }
  0x64   :  { %541 = vmatprep.subr.mxu0 %v622_v0 }
  0x65   :  { %542 = vmatpush3.msra.mxu0 %v258_v54 }
 0x106   :  { %v159_v48 = vpop.f32.mrf.mxu0 }
 0x107   :  { %v160_v49 = vadd.f32 %v387_v47, %v159_v48 }
 0x108   :  { %v475_v50 = vpop.f32.mrf.mxu0 }
 0x109   :  { %v163_v51 = vmax.f32 %v160_v49, 0.0 }
 0x10b   :  { %509 = vmatmul.mubr.f32.vlgmr.msra.gmra.mxu1 %v163_v51 }
 0x1cb   :  { %v253_v56 = vpop.f32.mrf.mxu1 }
 0x1cc   :  { %v254_v57 = vadd.f32 %v388_v55, %v253_v56 }
 0x1cd   :  { %v510_v58 = vpop.f32.mrf.mxu1 }
 0x1ce   :  { %v257_v59 = vmax.f32 %v254_v57, 0.0 }
 0x1d0   :  { %544 = vmatmul.mubr.f32.vlgmr.msra.gmra.mxu0 %v257_v59 }
 0x290   :  { %v347_v63 = vpop.f32.mrf.mxu0 }
 0x291   :  { %v348_v0 = vadd.f32 %v389_v62, %v347_v63 }
 0x292   :  { %v545_v1 = vpop.f32.mrf.mxu0 }
 0x293   :  { %351 = vst [vmem:[%s757_s7] sm:$0xff] %v348_v0  ;;  %v355_v2 = vsel %vm354_vm1, %v348_v0, -inf }
 0x294   :  { %356 = vmax.xlane.f32.xlu0 %v355_v2 }
 0x31d   :  { %v357_v3 = vpop.xlane.xlu0 %356 }
 0x31e   :  { %vm358_vm2 = vcmp.eq.f32.partialorder %v355_v2, %v357_v3 }
 0x31f   :  { %vm359_vm3 = vmand %vm358_vm2, %vm354_vm1 }
 0x320   :  { %v360_v4 = vsel %vm359_vm3, %v353_v61, 4 }
 0x321   :  { %v362_v5 = vshra.s32 %v360_v4, 16  ;;  %v361_v7 = vand.u32 65535, %v360_v4 }
 0x323   :  { %v364_v6 = vcvt.s32.f32 %v362_v5  ;;  %v363_v9 = vcvt.s32.f32 %v361_v7 }
 0x325   :  { %365 = vmin.xlane.f32.xlu0 %v364_v6 }
 0x3ae   :  { %v366_v8 = vpop.xlane.xlu0 %365 }
 0x3af   :  { %vm367_vm4 = vcmp.eq.f32.partialorder %v364_v6, %v366_v8  ;;  %v372_v11 = vcvt.f32.s32 %v366_v8 }
 0x3b0   :  { %v368_v10 = vsel %vm367_vm4, %v363_v9, inf }
 0x3b1   :  { %369 = vmin.xlane.f32.xlu1 %v368_v10  ;;  %v373_v13 = vshll.u32 %v372_v11, 16 }
 0x43a   :  { %v370_v12 = vpop.xlane.xlu1 %369 }
 0x43b   :  { %v371_v14 = vcvt.f32.s32 %v370_v12 }
 0x43d   :  { %v374_v15 = vadd.s32 %v373_v13, %v371_v14 }
 0x43f   :  { %376 = vst.msk [vmem:[%s758_s8] sm:$0xff] %vm375_vm5, %v374_v15 }
 0x440   :  { %385 = vsyncpa [#allocation3], 1 }
 0x441   :  { %386 = vsyncpa [#allocation5], 1 }

</bundles_post_ra>
